<compile_context>
chip_gen: v6e
topology: v6e:2x2x1
jax: 0.10.0
libtpu: 0.0.40
codegen_flags: <defaults>
</compile_context>

<pallas_src>
import jax
import jax.numpy as jnp
from jax.experimental import pallas as pl
from jax.experimental.pallas import tpu as pltpu

EPS = 1e-5          # nn.BatchNorm1d default eps
LANE = 128
SUBLANE_BF16 = 16   # bf16 sublane packing is (16, 128)

PARAM_ORDER = ["w1", "b1", "w2", "b2", "w3", "b3", "wh", "bh"]


def _round_up(x, m):
    return ((x + m - 1) // m) * m


def _num_tensorcores():
    """Parallel TensorCores per device (v7x has 2; v5e/v6e have 1)."""
    try:
        kind = jax.devices()[0].device_kind.lower()
    except Exception:
        return 1
    return 2 if "v7" in kind else 1


# ---------------------------------------------------------------------------
# Kernel
# ---------------------------------------------------------------------------
def cpnet_kernel(a_ref,                      # (1,1) f32 in SMEM: PReLU slope
                 x_ref,                      # (blk, M) bf16
                 w1_ref, b1_ref,
                 w2_ref, b2_ref,
                 w3_ref, b3_ref,
                 wh_ref, bh_ref,
                 out_ref):                   # (blk, C) f32
    a = a_ref[0, 0]                          # scalar, read once

    def act(y):                              # PReLU, shared slope, f32
        return jnp.where(y >= 0.0, y, a * y)

    # Dropout: identity in eval mode.
    # TODO(synk): training-mode dropout would use pltpu.prng_seed / prng_random_bits.

    # Layer 1: x already bf16 (wrapper cast) -> feed the MXU directly.
    h = act(jnp.dot(x_ref[...], w1_ref[...],
                    preferred_element_type=jnp.float32) + b1_ref[...])
    h = act(jnp.dot(h.astype(w2_ref.dtype), w2_ref[...],
                    preferred_element_type=jnp.float32) + b2_ref[...])
    h = act(jnp.dot(h.astype(w3_ref.dtype), w3_ref[...],
                    preferred_element_type=jnp.float32) + b3_ref[...])
    # Head: true C columns (no lane padding) -> 16x smaller HBM writeback.
    out_ref[...] = (jnp.dot(h.astype(wh_ref.dtype), wh_ref[...],
                            preferred_element_type=jnp.float32) + bh_ref[...])


# ---------------------------------------------------------------------------
# One-time parameter prep: fold BN into Linear, pad hidden dims, cast to bf16
# ---------------------------------------------------------------------------
def fold_params(p, *, dot_dtype=jnp.bfloat16, pad_lanes=LANE):
    """Fold BatchNorm into the Linear layers, zero-pad the HIDDEN feature dims
    to the lane width (head output stays at its true width C), and cast matmul
    weights to `dot_dtype`. Do this ONCE at init."""
    def fold(w, b, g, be, mu, var):
        scale = g * jax.lax.rsqrt(var + EPS)          # (1, H)
        return w * scale, (b - mu) * scale + be       # (in, H), (1, H)

    w1, b1 = fold(p["w1"], p["b1"], p["g1"], p["be1"], p["mu1"], p["var1"])
    w2, b2 = fold(p["w2"], p["b2"], p["g2"], p["be2"], p["mu2"], p["var2"])
    w3, b3 = fold(p["w3"], p["b3"], p["g3"], p["be3"], p["mu3"], p["var3"])
    wh, bh = p["wh"], p["bh"]

    def pad_wb(w, b, rows_to, cols_to):
        w = jnp.pad(w, ((0, rows_to - w.shape[0]), (0, cols_to - w.shape[1])))
        b = jnp.pad(b, ((0, 0), (0, cols_to - b.shape[1])))
        return w, b

    M = w1.shape[0]
    H1, H2, H3, C = w1.shape[1], w2.shape[1], w3.shape[1], wh.shape[1]
    H1p, H2p, H3p = (_round_up(d, pad_lanes) for d in (H1, H2, H3))

    # Zero-padded hidden columns produce 0 pre-activation -> PReLU(0)=0, and
    # the corresponding zero rows of the next weight contribute nothing, so the
    # padded network is numerically identical.  The head keeps its true C
    # columns so the output store is exactly (blk, C).
    w1, b1 = pad_wb(w1, b1, M, H1p)
    w2, b2 = pad_wb(w2, b2, H1p, H2p)
    w3, b3 = pad_wb(w3, b3, H2p, H3p)
    wh, bh = pad_wb(wh, bh, H3p, C)

    return {
        "w1": w1.astype(dot_dtype), "b1": b1.astype(jnp.float32),
        "w2": w2.astype(dot_dtype), "b2": b2.astype(jnp.float32),
        "w3": w3.astype(dot_dtype), "b3": b3.astype(jnp.float32),
        "wh": wh.astype(dot_dtype), "bh": bh.astype(jnp.float32),
        "a": p["a"].reshape(1, 1).astype(jnp.float32),
    }


# ---------------------------------------------------------------------------
# Wrapper
# ---------------------------------------------------------------------------
def cpnet_forward(x, folded, *, block_b=512, num_parallel_cores=None):
    B, M = x.shape
    C = folded["wh"].shape[1]

    if num_parallel_cores is None:
        num_parallel_cores = _num_tensorcores()

    # x goes to the MXU as bf16 anyway: quantise in the wrapper so the
    # HBM->VMEM stream is half the bytes and the kernel skips the pack.
    x = x.astype(jnp.bfloat16)

    # Batch tiling.  bf16 x tile => 16-row alignment.  One tile if the batch
    # fits (grid is a serial loop on single-TC chips, splitting is pure
    # overhead); on v7x round the number of grid steps to a multiple of 2 so
    # both TensorCores get equal work.  Tile size is balanced across steps to
    # minimise dead-row padding.  VMEM at blk<=512 is negligible on all
    # generations (well under the 32 MiB scoped default / 64 MiB v7x physical).
    sub = SUBLANE_BF16
    b_pad = _round_up(B, sub)
    blk_cap = max(_round_up(block_b, sub), sub)
    grid_b = pl.cdiv(b_pad, blk_cap)
    if num_parallel_cores > 1:
        grid_b = _round_up(grid_b, num_parallel_cores)
    blk = _round_up(pl.cdiv(b_pad, grid_b), sub)      # balanced tile size
    grid_b = pl.cdiv(b_pad, blk)
    b_total = grid_b * blk
    if b_total != B:
        x = jnp.pad(x, ((0, b_total - B), (0, 0)))

    params = [folded[k] for k in PARAM_ORDER]

    in_specs = [
        # PReLU slope: 4-byte constant -> SMEM (no VMEM double-buffer DMA).
        pl.BlockSpec(memory_space=pltpu.MemorySpace.SMEM),
        pl.BlockSpec((blk, M), lambda i: (i, 0)),
    ]
    # Weights / biases are small; keep each fully resident in VMEM.
    in_specs += [pl.BlockSpec(p.shape, lambda i: (0, 0)) for p in params]
    # Output: full (unpadded) C as the last dim -> 16x fewer writeback bytes.
    out_spec = pl.BlockSpec((blk, C), lambda i: (i, 0))

    H1p, H2p, H3p = (folded["w1"].shape[1], folded["w2"].shape[1],
                     folded["w3"].shape[1])
    flops = 2 * b_total * (M * H1p + H1p * H2p + H2p * H3p + H3p * C)
    bytes_accessed = (x.size * x.dtype.itemsize
                      + b_total * C * 4
                      + sum(int(p.size) * p.dtype.itemsize for p in params))

    out = pl.pallas_call(
        cpnet_kernel,
        grid=(grid_b,),
        in_specs=in_specs,
        out_specs=out_spec,
        out_shape=jax.ShapeDtypeStruct((b_total, C), jnp.float32),
        compiler_params=pltpu.CompilerParams(
            dimension_semantics=("parallel",)),
        cost_estimate=pl.CostEstimate(
            flops=flops, transcendentals=0, bytes_accessed=bytes_accessed),
    )(folded["a"], x, *params)

    return out[:B]


# ---------------------------------------------------------------------------
# References
# ---------------------------------------------------------------------------
def cpnet_reference_f32(x, p):
    """Original module semantics (eval mode), full f32, BN unfolded."""
    a = p["a"].reshape(())

    def layer(h, w, b, g, be, mu, var):
        y = h @ w + b
        y = (y - mu) * (g * jax.lax.rsqrt(var + EPS)) + be
        return jnp.where(y >= 0.0, y, a * y)

    h = layer(x, p["w1"], p["b1"], p["g1"], p["be1"], p["mu1"], p["var1"])
    h = layer(h, p["w2"], p["b2"], p["g2"], p["be2"], p["mu2"], p["var2"])
    h = layer(h, p["w3"], p["b3"], p["g3"], p["be3"], p["mu3"], p["var3"])
    return h @ p["wh"] + p["bh"]


def cpnet_reference_folded(x, folded):
    """Pure-JAX replica of the kernel numerics (bf16 dot inputs, f32 acc)."""
    a = folded["a"][0, 0]

    def layer(h, w, b):
        y = jnp.dot(h.astype(w.dtype), w, preferred_element_type=jnp.float32) + b
        return jnp.where(y >= 0.0, y, a * y)

    h = layer(x.astype(jnp.bfloat16), folded["w1"], folded["b1"])
    h = layer(h, folded["w2"], folded["b2"])
    h = layer(h, folded["w3"], folded["b3"])
    return jnp.dot(h.astype(folded["wh"].dtype), folded["wh"],
                   preferred_element_type=jnp.float32) + folded["bh"]


# ---------------------------------------------------------------------------
# Test harness
# ---------------------------------------------------------------------------
def make_params(key, M, H1, H2, H3, C):
    ks = jax.random.split(key, 22)

    def lin(kw, kb, fin, fout):
        bound = 1.0 / jnp.sqrt(fin)
        w = jax.random.uniform(kw, (fin, fout), jnp.float32, -bound, bound)
        b = jax.random.uniform(kb, (1, fout), jnp.float32, -bound, bound)
        return w, b

    def bn(kg, kb, km, kv, h):
        g = jax.random.uniform(kg, (1, h), jnp.float32, 0.5, 1.5)
        be = jax.random.uniform(kb, (1, h), jnp.float32, -0.5, 0.5)
        mu = jax.random.uniform(km, (1, h), jnp.float32, -0.1, 0.1)
        var = jax.random.uniform(kv, (1, h), jnp.float32, 0.5, 1.5)
        return g, be, mu, var

    p = {}
    p["w1"], p["b1"] = lin(ks[0], ks[1], M, H1)
    p["g1"], p["be1"], p["mu1"], p["var1"] = bn(ks[2], ks[3], ks[4], ks[5], H1)
    p["w2"], p["b2"] = lin(ks[6], ks[7], H1, H2)
    p["g2"], p["be2"], p["mu2"], p["var2"] = bn(ks[8], ks[9], ks[10], ks[11], H2)
    p["w3"], p["b3"] = lin(ks[12], ks[13], H2, H3)
    p["g3"], p["be3"], p["mu3"], p["var3"] = bn(ks[14], ks[15], ks[16], ks[17], H3)
    p["wh"], p["bh"] = lin(ks[18], ks[19], H3, C)
    p["a"] = jnp.full((1, 1), 0.25, jnp.float32)   # PReLU default init
    return p


if __name__ == "__main__":
    B, M, H1, H2, H3, C = 16, 32, 64, 64, 32, 8
    key = jax.random.PRNGKey(0)
    kx, kp = jax.random.split(key)
    x = jax.random.normal(kx, (B, M), jnp.float32)
    params = make_params(kp, M, H1, H2, H3, C)

    folded = fold_params(params)          # one-time: BN fold + lane pad + bf16
    out = cpnet_forward(x, folded, block_b=512)
    out = jax.block_until_ready(out)
    assert out.shape == (B, C)

    # Tight check vs a pure-JAX replica of the kernel's exact numerics.
    ref_folded = cpnet_reference_folded(x, folded)
    assert jnp.allclose(out, ref_folded, rtol=1e-3, atol=1e-3), \
        "mismatch vs folded (bf16) reference"

    # Sanity check vs the original unfolded f32 module math (only difference
    # is bf16 quantisation at the MXU inputs).
    ref_f32 = cpnet_reference_f32(x, params)
    assert jnp.allclose(out, ref_f32, rtol=5e-2, atol=1e-1), \
        "mismatch vs f32 reference"

    print("KERNEL_OK")
</pallas_src>

<mosaic_0001>
module attributes {stable_mosaic.version = 11 : i64} {
  func.func @cpnet_kernel(%arg0: i32, %arg1: memref<1x1xf32, #tpu.memory_space<smem>>, %arg2: memref<16x32xbf16, #tpu.memory_space<vmem>>, %arg3: memref<32x128xbf16, #tpu.memory_space<vmem>>, %arg4: memref<1x128xf32, #tpu.memory_space<vmem>>, %arg5: memref<128x128xbf16, #tpu.memory_space<vmem>>, %arg6: memref<1x128xf32, #tpu.memory_space<vmem>>, %arg7: memref<128x128xbf16, #tpu.memory_space<vmem>>, %arg8: memref<1x128xf32, #tpu.memory_space<vmem>>, %arg9: memref<128x8xbf16, #tpu.memory_space<vmem>>, %arg10: memref<1x8xf32, #tpu.memory_space<vmem>>, %arg11: memref<16x8xf32, #tpu.memory_space<vmem>>) attributes {dimension_semantics = [#tpu.dimension_semantics<parallel>], iteration_bounds = array<i64: 1>, scalar_prefetch = 0 : i64, scratch_operands = 0 : i64, tpu.core_type = #tpu.core_type<tc>, window_params = [{transform_indices = @transform_0, window_bounds = array<i64: 1, 1>}, {transform_indices = @transform_1, window_bounds = array<i64: 16, 32>}, {pipeline_mode = #tpu.pipeline_mode<synchronous>, transform_indices = @transform_2, window_bounds = array<i64: 32, 128>}, {pipeline_mode = #tpu.pipeline_mode<synchronous>, transform_indices = @transform_3, window_bounds = array<i64: 1, 128>}, {pipeline_mode = #tpu.pipeline_mode<synchronous>, transform_indices = @transform_4, window_bounds = array<i64: 128, 128>}, {pipeline_mode = #tpu.pipeline_mode<synchronous>, transform_indices = @transform_5, window_bounds = array<i64: 1, 128>}, {pipeline_mode = #tpu.pipeline_mode<synchronous>, transform_indices = @transform_6, window_bounds = array<i64: 128, 128>}, {pipeline_mode = #tpu.pipeline_mode<synchronous>, transform_indices = @transform_7, window_bounds = array<i64: 1, 128>}, {pipeline_mode = #tpu.pipeline_mode<synchronous>, transform_indices = @transform_8, window_bounds = array<i64: 128, 8>}, {pipeline_mode = #tpu.pipeline_mode<synchronous>, transform_indices = @transform_9, window_bounds = array<i64: 1, 8>}, {transform_indices = @transform_10, window_bounds = array<i64: 16, 8>}]} {
    %c0 = arith.constant 0 : index
    %c0_0 = arith.constant 0 : index
    %0 = memref.load %arg1[%c0, %c0_0] : memref<1x1xf32, #tpu.memory_space<smem>>
    %c0_1 = arith.constant 0 : index
    %c0_2 = arith.constant 0 : index
    %1 = vector.load %arg2[%c0_1, %c0_2] : memref<16x32xbf16, #tpu.memory_space<vmem>>, vector<16x32xbf16>
    %c0_3 = arith.constant 0 : index
    %c0_4 = arith.constant 0 : index
    %2 = vector.load %arg3[%c0_3, %c0_4] : memref<32x128xbf16, #tpu.memory_space<vmem>>, vector<32x128xbf16>
    %cst = arith.constant dense<0.000000e+00> : vector<16x128xf32>
    %3 = tpu.matmul %1, %2, %cst {dimension_numbers = #tpu.dot_dimension_numbers<[1], [0], [0], [1], [0, 0, 1, 1], [], []>} : vector<16x32xbf16>, vector<32x128xbf16>, vector<16x128xf32> -> vector<16x128xf32>
    %c0_5 = arith.constant 0 : index
    %c0_6 = arith.constant 0 : index
    %4 = vector.load %arg4[%c0_5, %c0_6] : memref<1x128xf32, #tpu.memory_space<vmem>>, vector<1x128xf32>
    %5 = vector.broadcast %4 : vector<1x128xf32> to vector<16x128xf32>
    %6 = arith.addf %3, %5 : vector<16x128xf32>
    %cst_7 = arith.constant 0.000000e+00 : f32
    %7 = vector.broadcast %cst_7 : f32 to vector<16x128xf32>
    %8 = arith.cmpf oge, %6, %7 : vector<16x128xf32>
    %9 = vector.broadcast %0 : f32 to vector<16x128xf32>
    %10 = arith.mulf %9, %6 : vector<16x128xf32>
    %11 = arith.select %8, %6, %10 : vector<16x128xi1>, vector<16x128xf32>
    %12 = arith.truncf %11 : vector<16x128xf32> to vector<16x128xbf16>
    %c0_8 = arith.constant 0 : index
    %c0_9 = arith.constant 0 : index
    %13 = vector.load %arg5[%c0_8, %c0_9] : memref<128x128xbf16, #tpu.memory_space<vmem>>, vector<128x128xbf16>
    %cst_10 = arith.constant dense<0.000000e+00> : vector<16x128xf32>
    %14 = tpu.matmul %12, %13, %cst_10 {dimension_numbers = #tpu.dot_dimension_numbers<[1], [0], [0], [1], [0, 0, 1, 1], [], []>} : vector<16x128xbf16>, vector<128x128xbf16>, vector<16x128xf32> -> vector<16x128xf32>
    %c0_11 = arith.constant 0 : index
    %c0_12 = arith.constant 0 : index
    %15 = vector.load %arg6[%c0_11, %c0_12] : memref<1x128xf32, #tpu.memory_space<vmem>>, vector<1x128xf32>
    %16 = vector.broadcast %15 : vector<1x128xf32> to vector<16x128xf32>
    %17 = arith.addf %14, %16 : vector<16x128xf32>
    %cst_13 = arith.constant 0.000000e+00 : f32
    %18 = vector.broadcast %cst_13 : f32 to vector<16x128xf32>
    %19 = arith.cmpf oge, %17, %18 : vector<16x128xf32>
    %20 = vector.broadcast %0 : f32 to vector<16x128xf32>
    %21 = arith.mulf %20, %17 : vector<16x128xf32>
    %22 = arith.select %19, %17, %21 : vector<16x128xi1>, vector<16x128xf32>
    %23 = arith.truncf %22 : vector<16x128xf32> to vector<16x128xbf16>
    %c0_14 = arith.constant 0 : index
    %c0_15 = arith.constant 0 : index
    %24 = vector.load %arg7[%c0_14, %c0_15] : memref<128x128xbf16, #tpu.memory_space<vmem>>, vector<128x128xbf16>
    %cst_16 = arith.constant dense<0.000000e+00> : vector<16x128xf32>
    %25 = tpu.matmul %23, %24, %cst_16 {dimension_numbers = #tpu.dot_dimension_numbers<[1], [0], [0], [1], [0, 0, 1, 1], [], []>} : vector<16x128xbf16>, vector<128x128xbf16>, vector<16x128xf32> -> vector<16x128xf32>
    %c0_17 = arith.constant 0 : index
    %c0_18 = arith.constant 0 : index
    %26 = vector.load %arg8[%c0_17, %c0_18] : memref<1x128xf32, #tpu.memory_space<vmem>>, vector<1x128xf32>
    %27 = vector.broadcast %26 : vector<1x128xf32> to vector<16x128xf32>
    %28 = arith.addf %25, %27 : vector<16x128xf32>
    %cst_19 = arith.constant 0.000000e+00 : f32
    %29 = vector.broadcast %cst_19 : f32 to vector<16x128xf32>
    %30 = arith.cmpf oge, %28, %29 : vector<16x128xf32>
    %31 = vector.broadcast %0 : f32 to vector<16x128xf32>
    %32 = arith.mulf %31, %28 : vector<16x128xf32>
    %33 = arith.select %30, %28, %32 : vector<16x128xi1>, vector<16x128xf32>
    %34 = arith.truncf %33 : vector<16x128xf32> to vector<16x128xbf16>
    %c0_20 = arith.constant 0 : index
    %c0_21 = arith.constant 0 : index
    %35 = vector.load %arg9[%c0_20, %c0_21] : memref<128x8xbf16, #tpu.memory_space<vmem>>, vector<128x8xbf16>
    %cst_22 = arith.constant dense<0.000000e+00> : vector<16x8xf32>
    %36 = tpu.matmul %34, %35, %cst_22 {dimension_numbers = #tpu.dot_dimension_numbers<[1], [0], [0], [1], [0, 0, 1, 1], [], []>} : vector<16x128xbf16>, vector<128x8xbf16>, vector<16x8xf32> -> vector<16x8xf32>
    %c0_23 = arith.constant 0 : index
    %c0_24 = arith.constant 0 : index
    %37 = vector.load %arg10[%c0_23, %c0_24] : memref<1x8xf32, #tpu.memory_space<vmem>>, vector<1x8xf32>
    %38 = vector.broadcast %37 : vector<1x8xf32> to vector<16x8xf32>
    %39 = arith.addf %36, %38 : vector<16x8xf32>
    %c0_25 = arith.constant 0 : index
    %c0_26 = arith.constant 0 : index
    %40 = vector.load %arg11[%c0_25, %c0_26] : memref<16x8xf32, #tpu.memory_space<vmem>>, vector<16x8xf32>
    tpu.vector_store %arg11[%c0_25, %c0_26], %39 {strides = array<i32>} : memref<16x8xf32, #tpu.memory_space<vmem>>, vector<16x8xf32>,
    return
  }
  func.func @transform_0(%arg0: i32) -> (i32, i32) {
    %c0_i32 = arith.constant 0 : i32
    %c0_i32_0 = arith.constant 0 : i32
    %c0_i32_1 = arith.constant 0 : i32
    return %c0_i32, %c0_i32_0 : i32, i32
  }
  func.func @transform_1(%arg0: i32) -> (i32, i32) {
    %c0_i32 = arith.constant 0 : i32
    %c0_i32_0 = arith.constant 0 : i32
    return %arg0, %c0_i32 : i32, i32
  }
  func.func @transform_2(%arg0: i32) -> (i32, i32) {
    %c0_i32 = arith.constant 0 : i32
    %c0_i32_0 = arith.constant 0 : i32
    %c0_i32_1 = arith.constant 0 : i32
    return %c0_i32, %c0_i32_0 : i32, i32
  }
  func.func @transform_3(%arg0: i32) -> (i32, i32) {
    %c0_i32 = arith.constant 0 : i32
    %c0_i32_0 = arith.constant 0 : i32
    %c0_i32_1 = arith.constant 0 : i32
    return %c0_i32, %c0_i32_0 : i32, i32
  }
  func.func @transform_4(%arg0: i32) -> (i32, i32) {
    %c0_i32 = arith.constant 0 : i32
    %c0_i32_0 = arith.constant 0 : i32
    %c0_i32_1 = arith.constant 0 : i32
    return %c0_i32, %c0_i32_0 : i32, i32
  }
  func.func @transform_5(%arg0: i32) -> (i32, i32) {
    %c0_i32 = arith.constant 0 : i32
    %c0_i32_0 = arith.constant 0 : i32
    %c0_i32_1 = arith.constant 0 : i32
    return %c0_i32, %c0_i32_0 : i32, i32
  }
  func.func @transform_6(%arg0: i32) -> (i32, i32) {
    %c0_i32 = arith.constant 0 : i32
    %c0_i32_0 = arith.constant 0 : i32
    %c0_i32_1 = arith.constant 0 : i32
    return %c0_i32, %c0_i32_0 : i32, i32
  }
  func.func @transform_7(%arg0: i32) -> (i32, i32) {
    %c0_i32 = arith.constant 0 : i32
    %c0_i32_0 = arith.constant 0 : i32
    %c0_i32_1 = arith.constant 0 : i32
    return %c0_i32, %c0_i32_0 : i32, i32
  }
  func.func @transform_8(%arg0: i32) -> (i32, i32) {
    %c0_i32 = arith.constant 0 : i32
    %c0_i32_0 = arith.constant 0 : i32
    %c0_i32_1 = arith.constant 0 : i32
    return %c0_i32, %c0_i32_0 : i32, i32
  }
  func.func @transform_9(%arg0: i32) -> (i32, i32) {
    %c0_i32 = arith.constant 0 : i32
    %c0_i32_0 = arith.constant 0 : i32
    %c0_i32_1 = arith.constant 0 : i32
    return %c0_i32, %c0_i32_0 : i32, i32
  }
  func.func @transform_10(%arg0: i32) -> (i32, i32) {
    %c0_i32 = arith.constant 0 : i32
    %c0_i32_0 = arith.constant 0 : i32
    return %arg0, %c0_i32 : i32, i32
  }
}

</mosaic_0001>

<bundles_post_ra>
// kernel: tpu_custom_call.1
= control target key start
LH: loop header
LB: loop body
LE: loop exit
PB: predicated region body
PF: predicated region fallthrough
CT: control target
= control target key end

     0   :  { %16 = vsyncpa [#allocation4], 0  ;;  %s929_s0 = inlined_call_operand.<no memory space> [shape: f32[1,1], index: 0, kind: input, shape index: {}]   ;;  %s930_s1 = inlined_call_operand.vmem [shape: bf16[16,32], index: 1, kind: input, shape index: {}]   ;;  %s931_s2 = inlined_call_operand.hbm [shape: bf16[32,128], index: 2, kind: input, shape index: {}]   ;;  %s932_s3 = inlined_call_operand.vmem [shape: f32[1,128], index: 3, kind: input, shape index: {}]   ;;  %s933_s4 = inlined_call_operand.vmem [shape: bf16[128,128], index: 4, kind: input, shape index: {}]   ;;  %s934_s5 = inlined_call_operand.hbm [shape: f32[1,128], index: 5, kind: input, shape index: {}]   ;;  %s935_s6 = inlined_call_operand.hbm [shape: bf16[128,128], index: 6, kind: input, shape index: {}]   ;;  %s936_s7 = inlined_call_operand.vmem [shape: f32[1,128], index: 7, kind: input, shape index: {}]   ;;  %s937_s8 = inlined_call_operand.vmem [shape: bf16[128,8], index: 8, kind: input, shape index: {}]   ;;  %s938_s9 = inlined_call_operand.vmem [shape: f32[1,8], index: 9, kind: input, shape index: {}]   ;;  %s939_s10 = inlined_call_operand.vmem [shape: f32[16,8], index: 10, kind: output, shape index: {}]  }
   0x1   :  { %17 = vsyncpa [#allocation6], 0  ;;  %s747_s13 = smov [#allocation5]   ;;  %s748_s15 = smov [#allocation3]  }
   0x2   :  { %s44_s14 = sshll.u32 %s747_s13, 4  ;;  %s27_s16 = sshll.u32 %s748_s15, 4  ;;  %s45_s14 = int_to_ptr.vmem [resolvable:$true] %s44_s14  ;;  %s28_s16 = int_to_ptr.vmem [resolvable:$true] %s27_s16 }
   0x3   :  { %s691_s17 = scalar_lea.vmem %s45_s14, 16  ;;  %s695_s18 = scalar_lea.vmem %s45_s14, 32 }
   0x4   :  { %p692_p0 = scmp.ne.s32.totalorder %s45_s14, %s691_s17  ;;  %p696_p1 = scmp.lt.s32.totalorder %s45_s14, %s45_s14 }
   0x5   :  { %p697_p2 = scmp.lt.s32.totalorder %s695_s18, %s691_s17 }
   0x7   :  { %p698_p3 = por %p697_p2, %p696_p1 }
   0x9   :  { %p699_p4 = pnand %p698_p3, %p692_p0 }
   0xb   :  { %702 = shalt.err (!%p699_p4)
}
   0xc   :  { %47 = dma.hbm_to_vmem [thread:$0]  %s934_s5, 16, %s45_s14, [#allocation6]  }
   0xd   :  { %s711_s21 = scalar_lea.vmem %s28_s16, 256  ;;  %p716_p6 = scmp.lt.s32.totalorder %s28_s16, %s28_s16 }
   0xe   :  { %p712_p5 = scmp.ne.s32.totalorder %s28_s16, %s711_s21  ;;  %p717_p7 = scmp.lt.s32.totalorder %s711_s21, %s711_s21 }
  0x10   :  { %p718_p8 = por %p717_p7, %p716_p6 }
  0x12   :  { %p719_p9 = pnand %p718_p8, %p712_p5 }
  0x14   :  { %722 = shalt.err (!%p719_p9)
}
  0x15   :  { %s749_s22 = smov 64   ;;  %s750_s23 = smov 4  }
  0x16   :  { %33 = dma.hbm_to_vmem [thread:$0]  %s931_s2, 256, %s28_s16, [#allocation4], %s749_s22, %s749_s22, %s750_s23  }
  0x17   :  { %s751_s26 = smov [#allocation7]  }
  0x18   :  { %s53_s27 = sshll.u32 %s751_s26, 4  ;;  %s54_s27 = int_to_ptr.vmem [resolvable:$true] %s53_s27 }
  0x19   :  { %s731_s28 = scalar_lea.vmem %s54_s27, 1024  ;;  %p736_p11 = scmp.lt.s32.totalorder %s54_s27, %s54_s27 }
  0x1a   :  { %p732_p10 = scmp.ne.s32.totalorder %s54_s27, %s731_s28  ;;  %p737_p12 = scmp.lt.s32.totalorder %s731_s28, %s731_s28 }
  0x1c   :  { %p738_p13 = por %p737_p12, %p736_p11 }
  0x1e   :  { %p739_p0 = pnand %p738_p13, %p732_p10 }
  0x20   :  { %742 = shalt.err (!%p739_p0)
}
  0x21   :  { %59 = dma.hbm_to_vmem [thread:$0]  %s935_s6, 1024, %s54_s27, [#allocation6], %s749_s22, %s749_s22, %s750_s23  }
  0x22   :  { %743 = dma.done.wait [#allocation4], 256  }
  0x23   :  { %744 = vsyncadd [#allocation4], 4294967040 }
  0x24   :  { %745 = dma.done.wait [#allocation6], 1040  }
  0x25   :  { %746 = vsyncadd [#allocation6], 4294966256  ;;  %v752_v0 = vmov 0.0   ;;  %vm753_vm0 = vmmov 0   ;;  %v656_v1 = vld [vmem:[#allocation3 + $0x8] sm:$0xff]   ;;  %v657_v2 = vld [vmem:[#allocation3] sm:$0xff]   ;;  %v874_v20 = vstv %s929_s0 }
  0x26   :  { %581 = vmatprep.subr.bf16.mxu0 %v752_v0  ;;  %585 = vmatprep.mubr.msk.bf16.mxu0 %vm753_vm0, %v752_v0  ;;  %v659_v3 = vld [vmem:[%s933_s4 + $0x38] sm:$0xff]   ;;  %v658_v4 = vld [vmem:[%s930_s1] sm:$0xff]   ;;  %v660_v5 = vld [vmem:[%s933_s4 + $0x30] sm:$0xff]   ;;  %vm107_vm1 = vcmask 261120   ;;  %vm510_vm8 = vcmask 64512  }
  0x27   :  { %589 = vmatprep.subr.bf16.mxu1 %v752_v0  ;;  %605 = vmatprep.mubr.msk.bf16.mxu1 %vm753_vm0, %v752_v0  ;;  %v661_v6 = vld [vmem:[%s933_s4 + $0x28] sm:$0xff]   ;;  %v662_v7 = vld [vmem:[%s933_s4 + $0x20] sm:$0xff]   ;;  %v663_v8 = vld [vmem:[%s933_s4 + $0x18] sm:$0xff]  }
  0x28   :  { %582 = vmatpush3.bf16.msra.mxu0 %v656_v1  ;;  %590 = vmatpush3.bf16.msra.mxu1 %v659_v3  ;;  %v664_v9 = vld [vmem:[%s933_s4 + $0x10] sm:$0xff]   ;;  %v665_v10 = vld [vmem:[%s933_s4 + $0x8] sm:$0xff]   ;;  %v666_v11 = vld [vmem:[%s933_s4] sm:$0xff]  }
  0x29   :  { %583 = vmatprep.subr.bf16.mxu0 %v752_v0  ;;  %591 = vmatprep.subr.bf16.mxu1 %v752_v0  ;;  %v667_v12 = vld [vmem:[#allocation7 + $0x38] sm:$0xff]   ;;  %v668_v13 = vld [vmem:[#allocation7 + $0x30] sm:$0xff]   ;;  %v669_v14 = vld [vmem:[#allocation7 + $0x28] sm:$0xff]  }
  0x2a   :  { %v670_v15 = vld [vmem:[#allocation7 + $0x20] sm:$0xff]   ;;  %v671_v16 = vld [vmem:[#allocation7 + $0x18] sm:$0xff]   ;;  %v519_v17 = vld [vmem:[%s932_s3] ss:$0 sm:$0xff] }
  0x2b   :  { %v672_v30 = vld [vmem:[#allocation7 + $0x10] sm:$0xff]   ;;  %v673_v31 = vld [vmem:[#allocation7 + $0x8] sm:$0xff]   ;;  %v674_v32 = vld [vmem:[#allocation7] sm:$0xff]  }
  0x2c   :  { %584 = vmatpush3.bf16.msra.mxu0 %v657_v2  ;;  %592 = vmatpush3.bf16.msra.mxu1 %v660_v5  ;;  %v675_v33 = vld [vmem:[%s937_s8 + $0x38] sm:$0xff]   ;;  %v676_v34 = vld [vmem:[%s937_s8 + $0x30] sm:$0xff]   ;;  %v677_v35 = vld [vmem:[%s937_s8 + $0x28] sm:$0xff]  }
  0x2d   :  { %609 = vmatprep.subr.bf16.mxu0 %v752_v0  ;;  %593 = vmatprep.subr.bf16.mxu1 %v752_v0  ;;  %v678_v36 = vld [vmem:[%s937_s8 + $0x20] sm:$0xff]   ;;  %v679_v37 = vld [vmem:[%s937_s8 + $0x18] sm:$0xff]   ;;  %v524_v38 = vld [vmem:[#allocation5] ss:$0 sm:$0xff] }
  0x2e   :  { %v680_v50 = vld [vmem:[%s937_s8 + $0x10] sm:$0xff]   ;;  %v681_v51 = vld [vmem:[%s937_s8 + $0x8] sm:$0xff]   ;;  %v682_v52 = vld [vmem:[%s937_s8] sm:$0xff]  }
  0x2f   :  { %586 = vmatmul.mubr.msk.bf16.vlgmr.msra.gmra.mxu0 %vm107_vm1, %v658_v4  ;;  %v533_v53 = vld [vmem:[%s936_s7] ss:$0 sm:$0xff] }
  0x30   :  { %625 = vmatprep.mubr.msk.bf16.mxu0 %vm753_vm0, %v752_v0  ;;  %594 = vmatpush3.bf16.msra.mxu1 %v661_v6  ;;  %v542_v1 = vld [vmem:[%s938_s9] ss:$0 sm:$0xff] }
  0x31   :  { %595 = vmatprep.subr.bf16.mxu1 %v752_v0  ;;  %610 = vmatpush3.bf16.msra.mxu0 %v667_v12 }
  0x32   :  { %611 = vmatprep.subr.bf16.mxu0 %v752_v0 }
  0x34   :  { %596 = vmatpush3.bf16.msra.mxu1 %v662_v7 }
  0x35   :  { %597 = vmatprep.subr.bf16.mxu1 %v752_v0  ;;  %612 = vmatpush3.bf16.msra.mxu0 %v668_v13 }
  0x36   :  { %613 = vmatprep.subr.bf16.mxu0 %v752_v0 }
  0x38   :  { %598 = vmatpush3.bf16.msra.mxu1 %v663_v8 }
  0x39   :  { %599 = vmatprep.subr.bf16.mxu1 %v752_v0  ;;  %614 = vmatpush3.bf16.msra.mxu0 %v669_v14 }
  0x3a   :  { %615 = vmatprep.subr.bf16.mxu0 %v752_v0 }
  0x3c   :  { %600 = vmatpush3.bf16.msra.mxu1 %v664_v9 }
  0x3d   :  { %601 = vmatprep.subr.bf16.mxu1 %v752_v0  ;;  %616 = vmatpush3.bf16.msra.mxu0 %v670_v15 }
  0x3e   :  { %617 = vmatprep.subr.bf16.mxu0 %v752_v0 }
  0x40   :  { %602 = vmatpush3.bf16.msra.mxu1 %v665_v10 }
  0x41   :  { %603 = vmatprep.subr.bf16.mxu1 %v752_v0  ;;  %618 = vmatpush3.bf16.msra.mxu0 %v671_v16 }
  0x42   :  { %619 = vmatprep.subr.bf16.mxu0 %v752_v0 }
  0x44   :  { %604 = vmatpush3.bf16.msra.mxu1 %v666_v11 }
  0x45   :  { %629 = vmatprep.subr.bf16.mxu1 %v752_v0  ;;  %620 = vmatpush3.bf16.msra.mxu0 %v672_v30 }
  0x46   :  { %621 = vmatprep.subr.bf16.mxu0 %v752_v0 }
  0x49   :  { %622 = vmatpush3.bf16.msra.mxu0 %v673_v31 }
  0x4a   :  { %623 = vmatprep.subr.bf16.mxu0 %v752_v0 }
  0x4d   :  { %624 = vmatpush3.bf16.msra.mxu0 %v674_v32 }
  0xef   :  { %v145_v18 = vpop.f32.mrf.mxu0 }
  0xf0   :  { %v146_v19 = vadd.f32 %v519_v17, %v145_v18 }
  0xf1   :  { %v587_v21 = vpop.f32.mrf.mxu0 }
  0xf2   :  { %v155_v23 = vmul.f32 %v874_v20, %v146_v19  ;;  %vm152_vm2 = vcmp.ge.f32.partialorder %v146_v19, 0.0 }
  0xf3   :  { %v148_v22 = vpop.f32.mrf.mxu0 }
  0xf4   :  { %v149_v24 = vadd.f32 %v519_v17, %v148_v22  ;;  %v157_v27 = vsel %vm152_vm2, %v146_v19, %v155_v23 }
  0xf5   :  { %v588_v25 = vpop.f32.mrf.mxu0 }
  0xf6   :  { %vm153_vm3 = vcmp.ge.f32.partialorder %v149_v24, 0.0  ;;  %v156_v26 = vmul.f32 %v874_v20, %v149_v24 }
  0xf8   :  { %v158_v28 = vsel %vm153_vm3, %v149_v24, %v156_v26 }
  0xf9   :  { %v159_v29 = vpack.c.bf16 %v158_v28, %v157_v27 }
  0xfb   :  { %606 = vmatmul.mubr.bf16.vlgmr.msra.gmra.mxu1 %v159_v29 }
  0xfc   :  { %645 = vmatprep.mubr.msk.bf16.mxu1 %vm753_vm0, %v752_v0  ;;  %630 = vmatpush3.bf16.msra.mxu1 %v675_v33 }
  0xfd   :  { %631 = vmatprep.subr.bf16.mxu1 %v752_v0 }
 0x100   :  { %632 = vmatpush3.bf16.msra.mxu1 %v676_v34 }
 0x101   :  { %633 = vmatprep.subr.bf16.mxu1 %v752_v0 }
 0x104   :  { %634 = vmatpush3.bf16.msra.mxu1 %v677_v35 }
 0x105   :  { %635 = vmatprep.subr.bf16.mxu1 %v752_v0 }
 0x108   :  { %636 = vmatpush3.bf16.msra.mxu1 %v678_v36 }
 0x109   :  { %637 = vmatprep.subr.bf16.mxu1 %v752_v0 }
 0x10c   :  { %638 = vmatpush3.bf16.msra.mxu1 %v679_v37 }
 0x10d   :  { %639 = vmatprep.subr.bf16.mxu1 %v752_v0 }
 0x110   :  { %640 = vmatpush3.bf16.msra.mxu1 %v680_v50 }
 0x111   :  { %641 = vmatprep.subr.bf16.mxu1 %v752_v0 }
 0x114   :  { %642 = vmatpush3.bf16.msra.mxu1 %v681_v51 }
 0x115   :  { %643 = vmatprep.subr.bf16.mxu1 %v752_v0 }
 0x118   :  { %644 = vmatpush3.bf16.msra.mxu1 %v682_v52 }
 0x1bb   :  { %v265_v39 = vpop.f32.mrf.mxu1 }
 0x1bc   :  { %v266_v40 = vadd.f32 %v524_v38, %v265_v39 }
 0x1bd   :  { %v607_v41 = vpop.f32.mrf.mxu1 }
 0x1be   :  { %v274_v43 = vmul.f32 %v266_v40, %v874_v20  ;;  %vm272_vm4 = vcmp.ge.f32.partialorder %v266_v40, 0.0 }
 0x1bf   :  { %v268_v42 = vpop.f32.mrf.mxu1 }
 0x1c0   :  { %v269_v44 = vadd.f32 %v524_v38, %v268_v42  ;;  %v276_v47 = vsel %vm272_vm4, %v266_v40, %v274_v43 }
 0x1c1   :  { %v608_v45 = vpop.f32.mrf.mxu1 }
 0x1c2   :  { %vm273_vm5 = vcmp.ge.f32.partialorder %v269_v44, 0.0  ;;  %v275_v46 = vmul.f32 %v269_v44, %v874_v20 }
 0x1c4   :  { %v277_v48 = vsel %vm273_vm5, %v269_v44, %v275_v46 }
 0x1c5   :  { %v278_v49 = vpack.c.bf16 %v277_v48, %v276_v47 }
 0x1c7   :  { %626 = vmatmul.mubr.bf16.vlgmr.msra.gmra.mxu0 %v278_v49 }
 0x287   :  { %v384_v54 = vpop.f32.mrf.mxu0 }
 0x288   :  { %v385_v55 = vadd.f32 %v533_v53, %v384_v54 }
 0x289   :  { %v627_v56 = vpop.f32.mrf.mxu0 }
 0x28a   :  { %v393_v58 = vmul.f32 %v385_v55, %v874_v20  ;;  %vm391_vm6 = vcmp.ge.f32.partialorder %v385_v55, 0.0 }
 0x28b   :  { %v387_v57 = vpop.f32.mrf.mxu0 }
 0x28c   :  { %v388_v59 = vadd.f32 %v533_v53, %v387_v57  ;;  %v395_v62 = vsel %vm391_vm6, %v385_v55, %v393_v58 }
 0x28d   :  { %v628_v60 = vpop.f32.mrf.mxu0 }
 0x28e   :  { %vm392_vm7 = vcmp.ge.f32.partialorder %v388_v59, 0.0  ;;  %v394_v61 = vmul.f32 %v388_v59, %v874_v20 }
 0x290   :  { %v396_v63 = vsel %vm392_vm7, %v388_v59, %v394_v61 }
 0x291   :  { %v397_v0 = vpack.c.bf16 %v396_v63, %v395_v62 }
 0x293   :  { %646 = vmatmul.mubr.bf16.vlgmr.msra.gmra.mxu1 %v397_v0 }
 0x353   :  { %v503_v2 = vpop.f32.mrf.mxu1 }
 0x354   :  { %v504_v3 = vadd.f32 %v542_v1, %v503_v2 }
 0x355   :  { %v647_v4 = vpop.f32.mrf.mxu1 }
 0x356   :  { %511 = vst.msk [vmem:[%s939_s10] sm:$0xff] %vm510_vm8, %v504_v3 }
 0x357   :  { %v506_v5 = vpop.f32.mrf.mxu1 }
 0x358   :  { %v507_v6 = vadd.f32 %v542_v1, %v506_v5 }
 0x359   :  { %v648_v7 = vpop.f32.mrf.mxu1 }
 0x35a   :  { %512 = vst.msk [vmem:[%s939_s10 + $0x8] sm:$0xff] %vm510_vm8, %v507_v6 }
 0x35b   :  { %517 = vsyncpa [#allocation4], 1 }
 0x35c   :  { %518 = vsyncpa [#allocation6], 1 }

</bundles_post_ra>
